<compile_context>
chip_gen: v6e
topology: v6e:2x2x1
jax: 0.10.0
libtpu: 0.0.40
codegen_flags: <defaults>
</compile_context>

<pallas_src>
import jax
import jax.numpy as jnp
from jax import lax
from jax.experimental import pallas as pl
from jax.experimental.pallas import tpu as pltpu


_VMEM_BUDGET = 40 * 1024 * 1024   # target for double-buffered tiles (+acc); fits v7x 64 MiB
_VMEM_LIMIT = 64 * 1024 * 1024    # scoped-VMEM limit (unlocks v5e/v6e small defaults)


# ---------------------------------------------------------------------------
# Kernels
# ---------------------------------------------------------------------------

def _resident_kernel(x_ref, w2_ref, b2_ref, o_ref):
    """Weight-resident path: tn == tk == D, grid = (B // tm,).

    W2/bias block indices are constant across the grid -> DMA'd once, kept in
    VMEM. The single x block serves both the matmul and the residual add.
    """
    x = x_ref[...]
    acc = lax.dot_general(                       # x (tm, D) . W2 (Dout, Din), NT
        x, w2_ref[...],
        dimension_numbers=(((1,), (1,)), ((), ())),
        preferred_element_type=jnp.float32)
    acc += b2_ref[...].astype(jnp.float32)       # bias, broadcast over rows
    acc += x.astype(jnp.float32)                 # residual
    o_ref[...] = acc.astype(o_ref.dtype)


def _tiled_kernel_f32out(x_ref, w2_ref, b2_ref, o_ref):
    """Tiled path, f32 output: accumulate directly into the resident o_ref."""
    j = pl.program_id(1)
    k = pl.program_id(2)

    @pl.when(k == 0)
    def _():
        o_ref[...] = jnp.broadcast_to(
            b2_ref[...].astype(jnp.float32), o_ref.shape)

    x = x_ref[...]
    o_ref[...] += lax.dot_general(
        x, w2_ref[...],
        dimension_numbers=(((1,), (1,)), ((), ())),
        preferred_element_type=jnp.float32)

    # tn == tk, so the x block at k == j is exactly the residual block (i, j).
    @pl.when(k == j)
    def _():
        o_ref[...] += x.astype(jnp.float32)


def _tiled_kernel(x_ref, w2_ref, b2_ref, o_ref, acc_ref):
    """Tiled path, non-f32 output: f32 VMEM accumulator + downcast epilogue."""
    j = pl.program_id(1)
    k = pl.program_id(2)

    @pl.when(k == 0)
    def _():
        acc_ref[...] = jnp.broadcast_to(
            b2_ref[...].astype(jnp.float32), acc_ref.shape)

    x = x_ref[...]
    acc_ref[...] += lax.dot_general(
        x, w2_ref[...],
        dimension_numbers=(((1,), (1,)), ((), ())),
        preferred_element_type=jnp.float32)

    @pl.when(k == j)
    def _():
        acc_ref[...] += x.astype(jnp.float32)

    @pl.when(k == pl.num_programs(2) - 1)
    def _():
        o_ref[...] = acc_ref[...].astype(o_ref.dtype)


# ---------------------------------------------------------------------------
# Tile planning
# ---------------------------------------------------------------------------

def _tm_candidates(batch):
    cands = [c for c in (1024, 512, 256, 128, 64, 32, 16, 8)
             if c <= batch and batch % c == 0]
    return cands if cands else [batch]     # tiny/odd batch: one full-extent block


def _plan(batch, dim, x_bytes, w_bytes, out_bytes):
    """Return (tm, tn, tk).  tn == tk == dim means the weight-resident path."""
    tms = _tm_candidates(batch)
    # Prefer >= 2 row blocks when the batch permits (keeps both v7x TCs busy).
    pref = [c for c in tms if batch // c >= 2] or tms

    def resident_fp(tm_):
        return (2 * dim * dim * w_bytes            # W2 double buffer (DMA'd once)
                + 2 * dim * 4                      # bias
                + 2 * tm_ * dim * (x_bytes + out_bytes))

    for tm_ in pref:
        if resident_fp(tm_) <= _VMEM_BUDGET:
            return tm_, dim, dim
    if dim % 128 != 0:
        # Non-128-multiple feature dim: blocks must span the full dim anyway.
        return pref[-1], dim, dim

    # Tiled fallback for very large D: tn == tk (residual folded from the x
    # block), 256-multiples preferred to fill the v6e/v7x 256x256 MXU.
    for tnk in (1024, 512, 256, 128):
        if dim % tnk:
            continue
        for tm_ in pref:
            fp = (2 * tm_ * tnk * (x_bytes + out_bytes)   # x + out tiles
                  + 2 * tnk * tnk * w_bytes               # W2 tiles
                  + 2 * tnk * 4                           # bias
                  + tm_ * tnk * 4)                        # f32 accumulator
            if fp <= _VMEM_BUDGET:
                return tm_, tnk, tnk
    return pref[-1], 128, 128


# ---------------------------------------------------------------------------
# Wrapper
# ---------------------------------------------------------------------------

def residual_unit(x, w1, b1, w2, b2, *, tm=None, tn=None, tk=None,
                  matmul_dtype=None):
    """Forward pass of ResidualUnit: fc2(x) + x.

    w1/b1 (fc1) are accepted for API parity with the PyTorch module but are
    dead in the reference forward() (fc2 overwrites the fc1+relu result).
    w2 is PyTorch-style (out_features, in_features); b2 is (D,) or (1, D).
    matmul_dtype (e.g. jnp.bfloat16) casts x/W2 before the MXU (f32 accumulate
    kept) — numerics-visible, off by default.
    """
    del w1, b1  # dead branch in the reference forward()
    B, D = x.shape
    out_dtype = x.dtype
    b2 = b2.reshape(1, -1) if b2.ndim == 1 else b2
    assert w2.shape == (D, D) and b2.shape == (1, D)

    if matmul_dtype is not None:
        x = x.astype(matmul_dtype)
        w2 = w2.astype(matmul_dtype)

    x_bytes = jnp.dtype(x.dtype).itemsize
    w_bytes = jnp.dtype(w2.dtype).itemsize
    o_bytes = jnp.dtype(out_dtype).itemsize

    tm_p, tn_p, tk_p = _plan(B, D, x_bytes, w_bytes, o_bytes)
    tm = tm_p if tm is None else tm
    tn = tn_p if tn is None else tn
    tk = tk_p if tk is None else tk
    assert B % tm == 0 and D % tn == 0 and D % tk == 0, (
        "batch/features must be divisible by the chosen tiles")

    resident = (tn == D and tk == D)
    if not resident:
        assert tn == tk, "tiled path folds the residual from the x block (tn == tk)"

    compiler_params = dict(vmem_limit_bytes=_VMEM_LIMIT)

    if resident:
        grid = (B // tm,)
        in_specs = [
            pl.BlockSpec((tm, D), lambda i: (i, 0)),   # x (matmul + residual)
            pl.BlockSpec((D, D), lambda i: (0, 0)),    # W2, VMEM-resident
            pl.BlockSpec((1, D), lambda i: (0, 0)),    # bias, VMEM-resident
        ]
        out_specs = pl.BlockSpec((tm, D), lambda i: (i, 0))
        scratch_shapes = []
        kernel = _resident_kernel
        dim_sem = ("parallel",)
    else:
        grid = (B // tm, D // tn, D // tk)
        in_specs = [
            pl.BlockSpec((tm, tk), lambda i, j, k: (i, k)),   # x
            pl.BlockSpec((tn, tk), lambda i, j, k: (j, k)),   # W2 (out, in)
            pl.BlockSpec((1, tn), lambda i, j, k: (0, j)),    # bias
        ]
        out_specs = pl.BlockSpec((tm, tn), lambda i, j, k: (i, j))
        if jnp.dtype(out_dtype) == jnp.dtype(jnp.float32):
            kernel = _tiled_kernel_f32out      # accumulate straight into o_ref
            scratch_shapes = []
        else:
            kernel = _tiled_kernel
            scratch_shapes = [pltpu.VMEM((tm, tn), jnp.float32)]
        dim_sem = ("parallel", "parallel", "arbitrary")

    return pl.pallas_call(
        kernel,
        out_shape=jax.ShapeDtypeStruct((B, D), out_dtype),
        grid_spec=pltpu.PrefetchScalarGridSpec(
            num_scalar_prefetch=0,
            grid=grid,
            in_specs=in_specs,
            out_specs=out_specs,
            scratch_shapes=scratch_shapes,
        ),
        compiler_params=pltpu.CompilerParams(
            dimension_semantics=dim_sem, **compiler_params),
    )(x, w2, b2)


def init_linear_params(key, in_features, out_features, dtype=jnp.float32):
    """Deterministic PyTorch-style nn.Linear init: U(-1/sqrt(in), 1/sqrt(in))."""
    kw, kb = jax.random.split(key)
    bound = 1.0 / jnp.sqrt(jnp.float32(in_features))
    w = jax.random.uniform(kw, (out_features, in_features), dtype,
                           minval=-bound, maxval=bound)
    b = jax.random.uniform(kb, (out_features,), dtype,
                           minval=-bound, maxval=bound)
    return w, b


if __name__ == "__main__":
    # --- small demo shape consistent with the module (resident-weight path) ---
    batch, input_size = 8, 128
    key = jax.random.PRNGKey(0)
    kx, k1, k2 = jax.random.split(key, 3)

    x = jax.random.normal(kx, (batch, input_size), jnp.float32)
    w1, b1 = init_linear_params(k1, input_size, input_size)  # fc1 (dead branch)
    w2, b2 = init_linear_params(k2, input_size, input_size)  # fc2

    out = jax.block_until_ready(residual_unit(x, w1, b1, w2, b2))
    ref = x @ w2.T + b2.reshape(1, -1) + x
    assert out.shape == (batch, input_size)
    assert jnp.allclose(out, ref, atol=1e-5, rtol=1e-5)

    # --- force the tiled f32 path (accumulate into o_ref, residual at k==j) ---
    B2, D2 = 128, 256
    kx2, kw2, kb2 = jax.random.split(jax.random.PRNGKey(1), 3)
    x2 = jax.random.normal(kx2, (B2, D2), jnp.float32)
    w2b = jax.random.normal(kw2, (D2, D2), jnp.float32) * 0.05
    b2b = jax.random.normal(kb2, (D2,), jnp.float32)
    out2 = jax.block_until_ready(
        residual_unit(x2, None, None, w2b, b2b, tm=64, tn=128, tk=128))
    ref2 = x2 @ w2b.T + b2b.reshape(1, -1) + x2
    assert jnp.allclose(out2, ref2, atol=1e-4, rtol=1e-4)

    # --- force the tiled bf16-output path (f32 scratch accumulator) ---------
    x2b = x2.astype(jnp.bfloat16)
    w2bb = w2b.astype(jnp.bfloat16)
    out3 = jax.block_until_ready(
        residual_unit(x2b, None, None, w2bb, b2b, tm=64, tn=128, tk=128))
    ref3 = (x2b.astype(jnp.float32) @ w2bb.astype(jnp.float32).T
            + b2b.reshape(1, -1) + x2b.astype(jnp.float32))
    assert jnp.allclose(out3.astype(jnp.float32), ref3, atol=5e-2, rtol=5e-2)

    print("KERNEL_OK")
</pallas_src>

<mosaic_0001>
module attributes {stable_mosaic.version = 11 : i64} {
  func.func @_resident_kernel(%arg0: i32, %arg1: memref<8x128xf32, #tpu.memory_space<vmem>>, %arg2: memref<128x128xf32, #tpu.memory_space<vmem>>, %arg3: memref<1x128xf32, #tpu.memory_space<vmem>>, %arg4: memref<8x128xf32, #tpu.memory_space<vmem>>) attributes {dimension_semantics = [#tpu.dimension_semantics<parallel>], iteration_bounds = array<i64: 1>, scalar_prefetch = 0 : i64, scratch_operands = 0 : i64, tpu.core_type = #tpu.core_type<tc>, window_params = [{transform_indices = @transform_0, window_bounds = array<i64: 8, 128>}, {pipeline_mode = #tpu.pipeline_mode<synchronous>, transform_indices = @transform_1, window_bounds = array<i64: 128, 128>}, {pipeline_mode = #tpu.pipeline_mode<synchronous>, transform_indices = @transform_2, window_bounds = array<i64: 1, 128>}, {transform_indices = @transform_3, window_bounds = array<i64: 8, 128>}]} {
    %c0 = arith.constant 0 : index
    %c0_0 = arith.constant 0 : index
    %0 = vector.load %arg1[%c0, %c0_0] : memref<8x128xf32, #tpu.memory_space<vmem>>, vector<8x128xf32>
    %c0_1 = arith.constant 0 : index
    %c0_2 = arith.constant 0 : index
    %1 = vector.load %arg2[%c0_1, %c0_2] : memref<128x128xf32, #tpu.memory_space<vmem>>, vector<128x128xf32>
    %cst = arith.constant dense<0.000000e+00> : vector<8x128xf32>
    %2 = tpu.matmul %0, %1, %cst {dimension_numbers = #tpu.dot_dimension_numbers<[1], [1], [0], [0], [0, 0, 1, 0], [], []>} : vector<8x128xf32>, vector<128x128xf32>, vector<8x128xf32> -> vector<8x128xf32>
    %c0_3 = arith.constant 0 : index
    %c0_4 = arith.constant 0 : index
    %3 = vector.load %arg3[%c0_3, %c0_4] : memref<1x128xf32, #tpu.memory_space<vmem>>, vector<1x128xf32>
    %4 = vector.broadcast %3 : vector<1x128xf32> to vector<8x128xf32>
    %5 = arith.addf %2, %4 : vector<8x128xf32>
    %6 = arith.addf %5, %0 : vector<8x128xf32>
    %c0_5 = arith.constant 0 : index
    %c0_6 = arith.constant 0 : index
    %7 = vector.load %arg4[%c0_5, %c0_6] : memref<8x128xf32, #tpu.memory_space<vmem>>, vector<8x128xf32>
    tpu.vector_store %arg4[%c0_5, %c0_6], %6 {strides = array<i32>} : memref<8x128xf32, #tpu.memory_space<vmem>>, vector<8x128xf32>,
    return
  }
  func.func @transform_0(%arg0: i32) -> (i32, i32) {
    %c0_i32 = arith.constant 0 : i32
    %c0_i32_0 = arith.constant 0 : i32
    return %arg0, %c0_i32 : i32, i32
  }
  func.func @transform_1(%arg0: i32) -> (i32, i32) {
    %c0_i32 = arith.constant 0 : i32
    %c0_i32_0 = arith.constant 0 : i32
    %c0_i32_1 = arith.constant 0 : i32
    return %c0_i32, %c0_i32_0 : i32, i32
  }
  func.func @transform_2(%arg0: i32) -> (i32, i32) {
    %c0_i32 = arith.constant 0 : i32
    %c0_i32_0 = arith.constant 0 : i32
    %c0_i32_1 = arith.constant 0 : i32
    return %c0_i32, %c0_i32_0 : i32, i32
  }
  func.func @transform_3(%arg0: i32) -> (i32, i32) {
    %c0_i32 = arith.constant 0 : i32
    %c0_i32_0 = arith.constant 0 : i32
    return %arg0, %c0_i32 : i32, i32
  }
}

</mosaic_0001>

<bundles_post_ra>
// kernel: tpu_custom_call.1
= control target key start
LH: loop header
LB: loop body
LE: loop exit
PB: predicated region body
PF: predicated region fallthrough
CT: control target
= control target key end

     0   :  { %8 = vsyncpa [#allocation3], 0  ;;  %s318_s0 = inlined_call_operand.hbm [shape: f32[8,128], index: 0, kind: input, shape index: {}]   ;;  %s319_s1 = inlined_call_operand.hbm [shape: f32[128,128], index: 1, kind: input, shape index: {}]   ;;  %s320_s2 = inlined_call_operand.vmem [shape: f32[1,128], index: 2, kind: input, shape index: {}]   ;;  %s321_s3 = inlined_call_operand.hbm [shape: f32[8,128], index: 3, kind: output, shape index: {}]  }
   0x1   :  { %9 = vsyncpa [#allocation6], 0 }
   0x2   :  { %10 = vsyncpa [#allocation4], 0  ;;  %s279_s12 = smov [#allocation2]   ;;  %s280_s14 = smov [#allocation5]  }
   0x3   :  { %s17_s13 = sshll.u32 %s279_s12, 4  ;;  %s26_s15 = sshll.u32 %s280_s14, 4  ;;  %s18_s13 = int_to_ptr.vmem [resolvable:$true] %s17_s13  ;;  %s27_s15 = int_to_ptr.vmem [resolvable:$true] %s26_s15 }
   0x4   :  { %s221_s16 = scalar_lea.vmem %s18_s13, 128  ;;  %p226_p1 = scmp.lt.s32.totalorder %s18_s13, %s18_s13 }
   0x5   :  { %p222_p0 = scmp.ne.s32.totalorder %s18_s13, %s221_s16  ;;  %p227_p2 = scmp.lt.s32.totalorder %s221_s16, %s221_s16 }
   0x7   :  { %p228_p3 = por %p227_p2, %p226_p1 }
   0x9   :  { %p229_p4 = pnand %p228_p3, %p222_p0 }
   0xb   :  { %232 = shalt.err (!%p229_p4)
}
   0xc   :  { %20 = dma.hbm_to_vmem [thread:$0]  %s318_s0, 128, %s18_s13, [#allocation3]  }
   0xd   :  { %s241_s19 = scalar_lea.vmem %s27_s15, 2048  ;;  %p246_p6 = scmp.lt.s32.totalorder %s27_s15, %s27_s15 }
   0xe   :  { %p242_p5 = scmp.ne.s32.totalorder %s27_s15, %s241_s19  ;;  %p247_p7 = scmp.lt.s32.totalorder %s241_s19, %s241_s19 }
  0x10   :  { %p248_p8 = por %p247_p7, %p246_p6 }
  0x12   :  { %p249_p9 = pnand %p248_p8, %p242_p5 }
  0x14   :  { %252 = shalt.err (!%p249_p9)
}
  0x15   :  { %s281_s20 = smov 128   ;;  %s282_s21 = smov 8  }
  0x16   :  { %32 = dma.hbm_to_vmem [thread:$0]  %s319_s1, 2048, %s27_s15, [#allocation6], %s281_s20, %s281_s20, %s282_s21  }
  0x17   :  { %273 = dma.done.wait [#allocation3], 128  }
  0x18   :  { %274 = vsyncadd [#allocation3], 4294967168 }
  0x19   :  { %275 = dma.done.wait [#allocation6], 2048  }
  0x1a   :  { %276 = vsyncadd [#allocation6], 4294965248  ;;  %v283_v0 = vmov 0.0   ;;  %vm284_vm0 = vmmov 0   ;;  %v57_v1 = vld [vmem:[#allocation5 + $0x78] sm:$0xff]  ;;  %v56_v2 = vld [vmem:[#allocation5 + $0x70] sm:$0xff] }
  0x1b   :  { %171 = vmatprep.subr.mxu0 %v283_v0  ;;  %203 = vmatprep.mubr.msk.f32.mxu0 %vm284_vm0, %v283_v0  ;;  %v55_v3 = vld [vmem:[#allocation5 + $0x68] sm:$0xff]  ;;  %v54_v4 = vld [vmem:[#allocation5 + $0x60] sm:$0xff]  ;;  %v53_v5 = vld [vmem:[#allocation5 + $0x58] sm:$0xff]  ;;  %s285_s24 = smov [#allocation7]  }
  0x1c   :  { %172 = vmatpush3.xpose.msra.mxu0 %v57_v1  ;;  %v52_v6 = vld [vmem:[#allocation5 + $0x50] sm:$0xff]  ;;  %v51_v7 = vld [vmem:[#allocation5 + $0x48] sm:$0xff]  ;;  %v50_v8 = vld [vmem:[#allocation5 + $0x40] sm:$0xff]  ;;  %s143_s25 = sshll.u32 %s285_s24, 4  ;;  %s144_s25 = int_to_ptr.vmem [resolvable:$true] %s143_s25 }
  0x1d   :  { %173 = vmatprep.subr.mxu0 %v283_v0  ;;  %v49_v9 = vld [vmem:[#allocation5 + $0x38] sm:$0xff]  ;;  %v48_v10 = vld [vmem:[#allocation5 + $0x30] sm:$0xff]  ;;  %v47_v11 = vld [vmem:[#allocation5 + $0x28] sm:$0xff]  ;;  %s253_s26 = scalar_lea.vmem %s144_s25, 128  ;;  %p258_p11 = scmp.lt.s32.totalorder %s144_s25, %s144_s25 }
  0x1e   :  { %v46_v12 = vld [vmem:[#allocation5 + $0x20] sm:$0xff]  ;;  %v45_v13 = vld [vmem:[#allocation5 + $0x18] sm:$0xff]  ;;  %v44_v14 = vld [vmem:[#allocation5 + $0x10] sm:$0xff]  ;;  %p254_p10 = scmp.ne.s32.totalorder %s144_s25, %s253_s26  ;;  %p259_p12 = scmp.lt.s32.totalorder %s253_s26, %s253_s26 }
  0x1f   :  { %v43_v15 = vld [vmem:[#allocation5 + $0x8] sm:$0xff]  ;;  %v42_v16 = vld [vmem:[#allocation5] sm:$0xff]  ;;  %v41_v17 = vld [vmem:[#allocation2] sm:$0xff] }
  0x20   :  { %174 = vmatpush3.xpose.msra.mxu0 %v56_v2  ;;  %v153_v18 = vld [vmem:[%s320_s2] ss:$0 sm:$0xff]  ;;  %p260_p13 = por %p259_p12, %p258_p11 }
  0x21   :  { %175 = vmatprep.subr.mxu0 %v283_v0 }
  0x22   :  { %p261_p0 = pnand %p260_p13, %p254_p10 }
  0x24   :  { %176 = vmatpush3.xpose.msra.mxu0 %v55_v3 }
  0x25   :  { %177 = vmatprep.subr.mxu0 %v283_v0 }
  0x28   :  { %178 = vmatpush3.xpose.msra.mxu0 %v54_v4 }
  0x29   :  { %179 = vmatprep.subr.mxu0 %v283_v0 }
  0x2c   :  { %180 = vmatpush3.xpose.msra.mxu0 %v53_v5 }
  0x2d   :  { %181 = vmatprep.subr.mxu0 %v283_v0 }
  0x30   :  { %182 = vmatpush3.xpose.msra.mxu0 %v52_v6 }
  0x31   :  { %183 = vmatprep.subr.mxu0 %v283_v0 }
  0x34   :  { %184 = vmatpush3.xpose.msra.mxu0 %v51_v7 }
  0x35   :  { %185 = vmatprep.subr.mxu0 %v283_v0 }
  0x38   :  { %186 = vmatpush3.xpose.msra.mxu0 %v50_v8 }
  0x39   :  { %187 = vmatprep.subr.mxu0 %v283_v0 }
  0x3c   :  { %188 = vmatpush3.xpose.msra.mxu0 %v49_v9 }
  0x3d   :  { %189 = vmatprep.subr.mxu0 %v283_v0 }
  0x40   :  { %190 = vmatpush3.xpose.msra.mxu0 %v48_v10 }
  0x41   :  { %191 = vmatprep.subr.mxu0 %v283_v0 }
  0x44   :  { %192 = vmatpush3.xpose.msra.mxu0 %v47_v11 }
  0x45   :  { %193 = vmatprep.subr.mxu0 %v283_v0 }
  0x48   :  { %194 = vmatpush3.xpose.msra.mxu0 %v46_v12 }
  0x49   :  { %195 = vmatprep.subr.mxu0 %v283_v0 }
  0x4c   :  { %196 = vmatpush3.xpose.msra.mxu0 %v45_v13 }
  0x4d   :  { %197 = vmatprep.subr.mxu0 %v283_v0 }
  0x50   :  { %198 = vmatpush3.xpose.msra.mxu0 %v44_v14 }
  0x51   :  { %199 = vmatprep.subr.mxu0 %v283_v0 }
  0x54   :  { %200 = vmatpush3.xpose.msra.mxu0 %v43_v15 }
  0x55   :  { %201 = vmatprep.subr.mxu0 %v283_v0 }
  0x58   :  { %202 = vmatpush3.xpose.msra.mxu0 %v42_v16 }
  0x5b   :  { %204 = vmatmul.mubr.f32.vlgmr.msra.gmra.mxu0 %v41_v17 }
 0x11b   :  { %v131_v19 = vpop.f32.mrf.mxu0 }
 0x11c   :  { %v132_v20 = vadd.f32 %v153_v18, %v131_v19 }
 0x11d   :  { %v205_v21 = vpop.f32.mrf.mxu0 }
 0x11e   :  { %v135_v22 = vadd.f32 %v132_v20, %v41_v17 }
 0x120   :  { %136 = vst [vmem:[#allocation7] sm:$0xff] %v135_v22 }
 0x121   :  { %264 = shalt.err (!%p261_p0)
}
 0x122   :  { %146 = dma.vmem_to_hbm [thread:$0]  %s144_s25, 128, %s321_s3, [#allocation4]  }
 0x123   :  { %277 = dma.done.wait [#allocation4], 128  }
 0x124   :  { %278 = vsyncadd [#allocation4], 4294967168 }
 0x125   :  { %150 = vsyncpa [#allocation3], 1 }
 0x126   :  { %151 = vsyncpa [#allocation6], 1 }
 0x127   :  { %152 = vsyncpa [#allocation4], 1 }

</bundles_post_ra>
